<compile_context>
chip_gen: v7x
topology: tpu7x:2x2x1
jax: 0.10.0
libtpu: 0.0.40
codegen_flags: <defaults>
</compile_context>

<pallas_src>
import jax
import jax.numpy as jnp
from jax.experimental import pallas as pl
from jax.experimental.pallas import tpu as pltpu

ORDER = 3                      # matches the sample's cubic fit
N = ORDER + 1                  # coefficients per axis
LANES = 128                    # lane width (fast axis)
SUBL = 8                       # f32 sublane granularity
MAX_BLOCK_ROWS = 1024          # ~1 MiB input block; fits every generation's
                               # default scoped VMEM with double buffering


def _brdf_kernel(w_ref, xy_ref, out_ref):
    # w_ref:  SMEM (N*N,) f32   (scalar-prefetched weights)
    # xy_ref: VMEM (2, block_rows, LANES) f32  -- [0]=n_dot_v, [1]=glossiness
    # out_ref:VMEM (block_rows, LANES) f32
    ndv = xy_ref[0]
    gloss = xy_ref[1]

    dim_y = None
    for y in range(N):
        # Horner in glossiness, first step fused (no broadcast needed):
        #   tmp = w[y*N] * g + w[y*N+1]; tmp = w[y*N+xi] + tmp * g  (xi>=2)
        tmp = w_ref[y * N] * gloss + w_ref[y * N + 1]
        for xi in range(2, N):
            tmp = w_ref[y * N + xi] + tmp * gloss
        # Fold into Horner in n_dot_v: dim_y = dim_x[y] + dim_y * n_dot_v
        dim_y = tmp if y == 0 else tmp + dim_y * ndv

    out_ref[...] = dim_y


def _round_up(a, b):
    return ((a + b - 1) // b) * b


def integrated_brdf_forward(weights, x):
    """weights: (N*N,) f32,  x: (B, 2) f32  ->  (B,) f32"""
    assert weights.shape == (N * N,)
    assert x.ndim == 2 and x.shape[1] == 2
    B = x.shape[0]

    # Single de-interleave of x: (B, 2) -> (2, B). Column 0 = n_dot_v,
    # column 1 = glossiness (PyTorch dim=1 split).
    xt = x.T.astype(jnp.float32)

    rows_needed = pl.cdiv(B, LANES)
    block_rows = min(MAX_BLOCK_ROWS, _round_up(rows_needed, SUBL))
    rows = _round_up(rows_needed, block_rows)
    total = rows * LANES

    pad = total - B
    if pad:
        xt = jnp.pad(xt, ((0, 0), (0, pad)))
    xy = xt.reshape(2, rows, LANES)

    grid = (rows // block_rows,)
    elems = total
    cost = pl.CostEstimate(
        flops=30 * elems,              # 4x(3 mul+3 add) + 3x(mul+add) per elem
        transcendentals=0,
        bytes_accessed=12 * elems,     # 2 f32 in + 1 f32 out per element
    )

    out = pl.pallas_call(
        _brdf_kernel,
        out_shape=jax.ShapeDtypeStruct((rows, LANES), jnp.float32),
        grid_spec=pltpu.PrefetchScalarGridSpec(
            num_scalar_prefetch=1,                      # weights -> SMEM
            grid=grid,
            in_specs=[
                # one stacked DMA stream per step: (2, block_rows, LANES)
                pl.BlockSpec((2, block_rows, LANES), lambda i, w: (0, i, 0)),
            ],
            out_specs=pl.BlockSpec((block_rows, LANES), lambda i, w: (i, 0)),
        ),
        compiler_params=pltpu.CompilerParams(
            dimension_semantics=("parallel",)),
        cost_estimate=cost,
    )(weights.astype(jnp.float32), xy)

    return out.reshape(-1)[:B]


def _reference_forward(weights, x):
    """Pure-JAX reference mirroring the PyTorch loop exactly."""
    n_dot_v = x[:, 0:1]
    gloss = x[:, 1:2]
    dim_x = []
    for y in range(N):
        tmp = jnp.broadcast_to(weights[y * N], gloss.shape)
        for xi in range(1, N):
            tmp = weights[y * N + xi] + tmp * gloss
        dim_x.append(tmp)
    dim_y = dim_x[0]
    for xi in range(1, N):
        dim_y = dim_x[xi] + dim_y * n_dot_v
    return jnp.squeeze(dim_y, axis=1)


if __name__ == "__main__":
    key = jax.random.PRNGKey(0)
    kw, kx1, kx2 = jax.random.split(key, 3)

    # Deterministic stand-in for torch.distributions.Uniform(0, 5).sample((n*n,))
    weights = jax.random.uniform(kw, (N * N,), dtype=jnp.float32,
                                 minval=0.0, maxval=5.0)

    ok = True
    for B, kx in ((1024, kx1), (333, kx2)):   # clean tile + ragged/padded tail
        x = jax.random.uniform(kx, (B, 2), dtype=jnp.float32)
        out = integrated_brdf_forward(weights, x)
        out = jax.block_until_ready(out)
        ref = _reference_forward(weights, x)
        ok = ok and (out.shape == (B,)) and bool(
            jnp.allclose(out, ref, rtol=1e-5, atol=1e-5))

    if ok:
        print("KERNEL_OK")
    else:
        print("KERNEL_MISMATCH")
</pallas_src>

<mosaic_0001>
module attributes {stable_mosaic.version = 11 : i64} {
  func.func @_brdf_kernel(%arg0: i32, %arg1: memref<16xf32, #tpu.memory_space<smem>>, %arg2: memref<2x8x128xf32, #tpu.memory_space<vmem>>, %arg3: memref<8x128xf32, #tpu.memory_space<vmem>>) attributes {dimension_semantics = [#tpu.dimension_semantics<parallel>], iteration_bounds = array<i64: 1>, scalar_prefetch = 1 : i64, scratch_operands = 0 : i64, tpu.core_type = #tpu.core_type<tc>, window_params = [{transform_indices = @transform_0, window_bounds = array<i64: 2, 8, 128>}, {transform_indices = @transform_1, window_bounds = array<i64: 8, 128>}]} {
    %c0 = arith.constant 0 : index
    %c0_0 = arith.constant 0 : index
    %c0_1 = arith.constant 0 : index
    %0 = vector.load %arg2[%c0, %c0_0, %c0_1] : memref<2x8x128xf32, #tpu.memory_space<vmem>>, vector<1x8x128xf32>
    %1 = vector.shape_cast %0 : vector<1x8x128xf32> to vector<8x128xf32>
    %c1 = arith.constant 1 : index
    %c0_2 = arith.constant 0 : index
    %c0_3 = arith.constant 0 : index
    %2 = vector.load %arg2[%c1, %c0_2, %c0_3] : memref<2x8x128xf32, #tpu.memory_space<vmem>>, vector<1x8x128xf32>
    %3 = vector.shape_cast %2 : vector<1x8x128xf32> to vector<8x128xf32>
    %c0_4 = arith.constant 0 : index
    %4 = memref.load %arg1[%c0_4] : memref<16xf32, #tpu.memory_space<smem>>
    %5 = vector.broadcast %4 : f32 to vector<8x128xf32>
    %6 = arith.mulf %5, %3 : vector<8x128xf32>
    %c1_5 = arith.constant 1 : index
    %7 = memref.load %arg1[%c1_5] : memref<16xf32, #tpu.memory_space<smem>>
    %8 = vector.broadcast %7 : f32 to vector<8x128xf32>
    %9 = arith.addf %6, %8 : vector<8x128xf32>
    %c2 = arith.constant 2 : index
    %10 = memref.load %arg1[%c2] : memref<16xf32, #tpu.memory_space<smem>>
    %11 = arith.mulf %9, %3 : vector<8x128xf32>
    %12 = vector.broadcast %10 : f32 to vector<8x128xf32>
    %13 = arith.addf %12, %11 : vector<8x128xf32>
    %c3 = arith.constant 3 : index
    %14 = memref.load %arg1[%c3] : memref<16xf32, #tpu.memory_space<smem>>
    %15 = arith.mulf %13, %3 : vector<8x128xf32>
    %16 = vector.broadcast %14 : f32 to vector<8x128xf32>
    %17 = arith.addf %16, %15 : vector<8x128xf32>
    %c4 = arith.constant 4 : index
    %18 = memref.load %arg1[%c4] : memref<16xf32, #tpu.memory_space<smem>>
    %19 = vector.broadcast %18 : f32 to vector<8x128xf32>
    %20 = arith.mulf %19, %3 : vector<8x128xf32>
    %c5 = arith.constant 5 : index
    %21 = memref.load %arg1[%c5] : memref<16xf32, #tpu.memory_space<smem>>
    %22 = vector.broadcast %21 : f32 to vector<8x128xf32>
    %23 = arith.addf %20, %22 : vector<8x128xf32>
    %c6 = arith.constant 6 : index
    %24 = memref.load %arg1[%c6] : memref<16xf32, #tpu.memory_space<smem>>
    %25 = arith.mulf %23, %3 : vector<8x128xf32>
    %26 = vector.broadcast %24 : f32 to vector<8x128xf32>
    %27 = arith.addf %26, %25 : vector<8x128xf32>
    %c7 = arith.constant 7 : index
    %28 = memref.load %arg1[%c7] : memref<16xf32, #tpu.memory_space<smem>>
    %29 = arith.mulf %27, %3 : vector<8x128xf32>
    %30 = vector.broadcast %28 : f32 to vector<8x128xf32>
    %31 = arith.addf %30, %29 : vector<8x128xf32>
    %32 = arith.mulf %17, %1 : vector<8x128xf32>
    %33 = arith.addf %31, %32 : vector<8x128xf32>
    %c8 = arith.constant 8 : index
    %34 = memref.load %arg1[%c8] : memref<16xf32, #tpu.memory_space<smem>>
    %35 = vector.broadcast %34 : f32 to vector<8x128xf32>
    %36 = arith.mulf %35, %3 : vector<8x128xf32>
    %c9 = arith.constant 9 : index
    %37 = memref.load %arg1[%c9] : memref<16xf32, #tpu.memory_space<smem>>
    %38 = vector.broadcast %37 : f32 to vector<8x128xf32>
    %39 = arith.addf %36, %38 : vector<8x128xf32>
    %c10 = arith.constant 10 : index
    %40 = memref.load %arg1[%c10] : memref<16xf32, #tpu.memory_space<smem>>
    %41 = arith.mulf %39, %3 : vector<8x128xf32>
    %42 = vector.broadcast %40 : f32 to vector<8x128xf32>
    %43 = arith.addf %42, %41 : vector<8x128xf32>
    %c11 = arith.constant 11 : index
    %44 = memref.load %arg1[%c11] : memref<16xf32, #tpu.memory_space<smem>>
    %45 = arith.mulf %43, %3 : vector<8x128xf32>
    %46 = vector.broadcast %44 : f32 to vector<8x128xf32>
    %47 = arith.addf %46, %45 : vector<8x128xf32>
    %48 = arith.mulf %33, %1 : vector<8x128xf32>
    %49 = arith.addf %47, %48 : vector<8x128xf32>
    %c12 = arith.constant 12 : index
    %50 = memref.load %arg1[%c12] : memref<16xf32, #tpu.memory_space<smem>>
    %51 = vector.broadcast %50 : f32 to vector<8x128xf32>
    %52 = arith.mulf %51, %3 : vector<8x128xf32>
    %c13 = arith.constant 13 : index
    %53 = memref.load %arg1[%c13] : memref<16xf32, #tpu.memory_space<smem>>
    %54 = vector.broadcast %53 : f32 to vector<8x128xf32>
    %55 = arith.addf %52, %54 : vector<8x128xf32>
    %c14 = arith.constant 14 : index
    %56 = memref.load %arg1[%c14] : memref<16xf32, #tpu.memory_space<smem>>
    %57 = arith.mulf %55, %3 : vector<8x128xf32>
    %58 = vector.broadcast %56 : f32 to vector<8x128xf32>
    %59 = arith.addf %58, %57 : vector<8x128xf32>
    %c15 = arith.constant 15 : index
    %60 = memref.load %arg1[%c15] : memref<16xf32, #tpu.memory_space<smem>>
    %61 = arith.mulf %59, %3 : vector<8x128xf32>
    %62 = vector.broadcast %60 : f32 to vector<8x128xf32>
    %63 = arith.addf %62, %61 : vector<8x128xf32>
    %64 = arith.mulf %49, %1 : vector<8x128xf32>
    %65 = arith.addf %63, %64 : vector<8x128xf32>
    %c0_6 = arith.constant 0 : index
    %c0_7 = arith.constant 0 : index
    %66 = vector.load %arg3[%c0_6, %c0_7] : memref<8x128xf32, #tpu.memory_space<vmem>>, vector<8x128xf32>
    tpu.vector_store %arg3[%c0_6, %c0_7], %65 {strides = array<i32>} : memref<8x128xf32, #tpu.memory_space<vmem>>, vector<8x128xf32>,
    return
  }
  func.func @transform_0(%arg0: i32, %arg1: memref<16xf32, #tpu.memory_space<smem>>) -> (i32, i32, i32) {
    %c0_i32 = arith.constant 0 : i32
    %c0_i32_0 = arith.constant 0 : i32
    %c0_i32_1 = arith.constant 0 : i32
    return %c0_i32, %arg0, %c0_i32_0 : i32, i32, i32
  }
  func.func @transform_1(%arg0: i32, %arg1: memref<16xf32, #tpu.memory_space<smem>>) -> (i32, i32) {
    %c0_i32 = arith.constant 0 : i32
    %c0_i32_0 = arith.constant 0 : i32
    return %arg0, %c0_i32 : i32, i32
  }
}

</mosaic_0001>

<bundles_post_ra>
// kernel: tpu_custom_call.1
= control target key start
LH: loop header
LB: loop body
LE: loop exit
PB: predicated region body
PF: predicated region fallthrough
CT: control target
= control target key end

     0   :  { %s266_s0 = inlined_call_operand.hbm [shape: f32[16], index: 0, kind: input, shape index: {}]   ;;  %s267_s1 = inlined_call_operand.hbm [shape: f32[2,8,128], index: 1, kind: input, shape index: {}]   ;;  %s268_s2 = inlined_call_operand.hbm [shape: f32[8,128], index: 2, kind: output, shape index: {}]  }
   0x1   :  { %s129_s11 = scalar_lea.hbm %s266_s0, 16 }
   0x2   :  { %p130_p0 = scmp.ne.s32.totalorder %s266_s0, %s129_s11  ;;  %p133_p1 = scmp.lt.u32.totalorder %s129_s11, %s266_s0 }
   0x4   :  { %p135_p2 = pnand %p133_p1, %p130_p0 }
   0x6   :  { %138 = shalt.err (!%p135_p2)  }
   0x7   :  { %s189_s16 = smov [#allocation3]  }
   0x8   :  { %8 = dma.hbm_to_smem %s266_s0, 16, %s189_s16, [#allocation2] }
   0x9   :  { %183 = dma.done.wait [#allocation2], 16 }
   0xa   :  { %184 = vsyncadd [#allocation2], 4294967280 }
   0xb   :  { %10 = sfence }
   0xc   :  { %11 = vsyncpa [#allocation5], 0 }
   0xd   :  { %12 = vsyncpa [#allocation6], 0  ;;  %s190_s19 = smov [#allocation4]   ;;  %s139_s23 = scalar_lea.hbm %s267_s1, 256 }
   0xe   :  { %s18_s20 = sshll.u32 %s190_s19, 4  ;;  %p140_p3 = scmp.ne.s32.totalorder %s267_s1, %s139_s23  ;;  %s19_s20 = int_to_ptr.vmem [resolvable:$true] %s18_s20 }
   0xf   :  { %p143_p4 = scmp.lt.u32.totalorder %s139_s23, %s267_s1 }
  0x11   :  { %p145_p5 = pnand %p143_p4, %p140_p3 }
  0x13   :  { %148 = shalt.err (!%p145_p5)
}
  0x14   :  { %s149_s0 = scalar_lea.vmem %s19_s20, 256  ;;  %p154_p7 = scmp.lt.s32.totalorder %s19_s20, %s19_s20 }
  0x15   :  { %p150_p6 = scmp.ne.s32.totalorder %s19_s20, %s149_s0  ;;  %p155_p8 = scmp.lt.s32.totalorder %s149_s0, %s149_s0 }
  0x17   :  { %p156_p9 = por %p155_p8, %p154_p7 }
  0x19   :  { %p157_p10 = pnand %p156_p9, %p150_p6 }
  0x1b   :  { %160 = shalt.err (!%p157_p10)
}
  0x1c   :  { %s191_s28 = smov 128   ;;  %s192_s29 = smov 8  }
  0x1d   :  { %24 = dma.hbm_to_vmem [thread:$0]  %s267_s1, 256, %s19_s20, [#allocation5], %s191_s28, %s191_s28, %s192_s29  }
  0x1e   :  { %185 = dma.done.wait [#allocation5], 256  }
  0x1f   :  { %186 = vsyncadd [#allocation5], 4294967040  ;;  %s31_s4 = sld [smem:[#allocation3]]  ;;  %s109_s5 = sld [smem:[#allocation3 + $0x1]]  ;;  %v30_v0 = vld [vmem:[#allocation4 + $0x8] sm:$0xff]  ;;  %v28_v27 = vld [vmem:[#allocation4] sm:$0xff] }
  0x20   :  { %s233_s6 = sld [smem:[#allocation3 + $0x2]]  ;;  %s112_s7 = sld [smem:[#allocation3 + $0x4]] }
  0x21   :  { %s113_s8 = sld [smem:[#allocation3 + $0x5]]  ;;  %s235_s9 = sld [smem:[#allocation3 + $0x6]] }
  0x22   :  { %s116_s10 = sld [smem:[#allocation3 + $0x8]]  ;;  %s117_s11 = sld [smem:[#allocation3 + $0x9]] }
  0x23   :  { %s237_s12 = sld [smem:[#allocation3 + $0x3]]  ;;  %s239_s13 = sld [smem:[#allocation3 + $0xa]] }
  0x24   :  { %s120_s1 = sld [smem:[#allocation3 + $0xc]]  ;;  %s121_s14 = sld [smem:[#allocation3 + $0xd]] }
  0x25   :  { %v32_v1 = vstv %s31_s4  ;;  %v35_v2 = vstv %s109_s5  ;;  %s241_s15 = sld [smem:[#allocation3 + $0x7]]  ;;  %s243_s16 = sld [smem:[#allocation3 + $0xe]] }
  0x26   :  { %v33_v3 = vmul.f32 %v32_v1, %v30_v0  ;;  %v46_v4 = vstv %s112_s7  ;;  %v39_v8 = vstv %s233_s6  ;;  %s246_s17 = sld [smem:[#allocation3 + $0xb]]  ;;  %s123_s18 = sld [smem:[#allocation3 + $0xf]] }
  0x27   :  { %v49_v5 = vstv %s113_s8  ;;  %v47_v7 = vmul.f32 %v46_v4, %v30_v0  ;;  %v53_v14 = vstv %s235_s9  ;;  %s193_s19 = smov [#allocation7]  }
  0x28   :  { %v36_v6 = vadd.f32 %v35_v2, %v33_v3  ;;  %v62_v9 = vstv %s116_s10  ;;  %v65_v10 = vstv %s117_s11  ;;  %s100_s20 = sshll.u32 %s193_s19, 4  ;;  %s101_s20 = int_to_ptr.vmem [resolvable:$true] %s100_s20 }
  0x29   :  { %v50_v12 = vadd.f32 %v49_v5, %v47_v7  ;;  %v63_v13 = vmul.f32 %v62_v9, %v30_v0  ;;  %v43_v21 = vstv %s237_s12  ;;  %v69_v22 = vstv %s239_s13  ;;  %s161_s21 = scalar_lea.vmem %s101_s20, 128  ;;  %p166_p12 = scmp.lt.s32.totalorder %s101_s20, %s101_s20 }
  0x2a   :  { %v38_v11 = vmul.f32 %v36_v6, %v30_v0  ;;  %v78_v15 = vstv %s120_s1  ;;  %v81_v16 = vstv %s121_s14  ;;  %p162_p11 = scmp.ne.s32.totalorder %s101_s20, %s161_s21  ;;  %p167_p13 = scmp.lt.s32.totalorder %s161_s21, %s161_s21 }
  0x2b   :  { %v52_v18 = vmul.f32 %v50_v12, %v30_v0  ;;  %v66_v19 = vadd.f32 %v65_v10, %v63_v13  ;;  %v79_v20 = vmul.f32 %v78_v15, %v30_v0  ;;  %v57_v28 = vstv %s241_s15 }
  0x2c   :  { %v40_v17 = vadd.f32 %v39_v8, %v38_v11  ;;  %v85_v29 = vstv %s243_s16  ;;  %v73_v34 = vstv %s246_s17  ;;  %v89_v42 = vstv %s123_s18  ;;  %p168_p0 = por %p167_p13, %p166_p12 }
  0x2d   :  { %v54_v24 = vadd.f32 %v53_v14, %v52_v18  ;;  %v68_v25 = vmul.f32 %v66_v19, %v30_v0  ;;  %v82_v26 = vadd.f32 %v81_v16, %v79_v20 }
  0x2e   :  { %v42_v23 = vmul.f32 %v40_v17, %v30_v0  ;;  %p169_p1 = pnand %p168_p0, %p162_p11 }
  0x2f   :  { %v56_v31 = vmul.f32 %v54_v24, %v30_v0  ;;  %v70_v32 = vadd.f32 %v69_v22, %v68_v25  ;;  %v84_v33 = vmul.f32 %v82_v26, %v30_v0 }
  0x30   :  { %v44_v30 = vadd.f32 %v43_v21, %v42_v23 }
  0x31   :  { %v58_v35 = vadd.f32 %v57_v28, %v56_v31  ;;  %v72_v37 = vmul.f32 %v70_v32, %v30_v0  ;;  %v86_v38 = vadd.f32 %v85_v29, %v84_v33 }
  0x32   :  { %v59_v36 = vmul.f32 %v44_v30, %v28_v27 }
  0x33   :  { %v74_v40 = vadd.f32 %v73_v34, %v72_v37  ;;  %v88_v41 = vmul.f32 %v86_v38, %v30_v0 }
  0x34   :  { %v60_v39 = vadd.f32 %v59_v36, %v58_v35 }
  0x35   :  { %v90_v45 = vadd.f32 %v89_v42, %v88_v41 }
  0x36   :  { %v75_v43 = vmul.f32 %v60_v39, %v28_v27 }
  0x38   :  { %v76_v44 = vadd.f32 %v75_v43, %v74_v40 }
  0x3a   :  { %v91_v46 = vmul.f32 %v76_v44, %v28_v27 }
  0x3c   :  { %v92_v47 = vadd.f32 %v91_v46, %v90_v45 }
  0x3e   :  { %93 = vst [vmem:[#allocation7] sm:$0xff] %v92_v47 }
  0x3f   :  { %172 = shalt.err (!%p169_p1)
}
  0x40   :  { %s173_s24 = scalar_lea.hbm %s268_s2, 128 }
  0x41   :  { %p174_p2 = scmp.ne.s32.totalorder %s268_s2, %s173_s24  ;;  %p177_p3 = scmp.lt.u32.totalorder %s173_s24, %s268_s2 }
  0x43   :  { %p179_p4 = pnand %p177_p3, %p174_p2 }
  0x45   :  { %182 = shalt.err (!%p179_p4)
}
  0x46   :  { %103 = dma.vmem_to_hbm [thread:$0]  %s101_s20, 128, %s268_s2, [#allocation6]  }
  0x47   :  { %187 = dma.done.wait [#allocation6], 128  }
  0x48   :  { %188 = vsyncadd [#allocation6], 4294967168 }
  0x49   :  { %107 = vsyncpa [#allocation5], 1 }
  0x4a   :  { %108 = vsyncpa [#allocation6], 1 }

</bundles_post_ra>
